<compile_context>
chip_gen: v5e
topology: v5e:2x2
jax: 0.10.0
libtpu: 0.0.40
codegen_flags: <defaults>
</compile_context>

<pallas_src>
import jax
import jax.numpy as jnp
from jax.experimental import pallas as pl
from jax.experimental.pallas import tpu as pltpu

BN_EPS = 1e-5


def _round_up(a, b):
    return -(-a // b) * b


def _tensorcores_per_chip():
    """2 TensorCores on v7x (and megacore v4/v5p); 1 on v5e/v6e. Conservative fallback: 1."""
    try:
        kind = jax.devices()[0].device_kind.lower()
    except Exception:
        return 1
    if any(tag in kind for tag in ("v7", "v4", "v5p", "v5 p")):
        return 2
    return 1


def _block_diag(w, pack):
    """Block-diagonal replication of w, `pack` times (no scipy dependency)."""
    if pack == 1:
        return w
    r, c = w.shape
    out = jnp.zeros((pack * r, pack * c), w.dtype)
    for j in range(pack):
        out = out.at[j * r:(j + 1) * r, j * c:(j + 1) * c].set(w)
    return out


def dfe_kernel(alpha_ref, x_ref, w1_ref, b1_ref, w2_ref, b2_ref, o_ref):
    # x streamed from HBM as f32; cast to bf16 on the VPU (free under the memory bound).
    x = x_ref[...].astype(w1_ref.dtype)

    # Linear 1 (BN already folded into w1/b1): bf16 x bf16 -> f32 accumulate
    h = jnp.dot(x, w1_ref[...], preferred_element_type=jnp.float32) + b1_ref[...]

    # PReLU with a single shared slope (scalar read from SMEM), f32 epilogue (v5e-safe).
    a = alpha_ref[0]
    h = jnp.where(h > 0, h, a * h)

    # Dropout: identity in eval mode.

    # Linear 2: cast activations to bf16 for the MXU, accumulate in f32.
    out = jnp.dot(h.astype(w2_ref.dtype), w2_ref[...], preferred_element_type=jnp.float32)
    o_ref[...] = (out + b2_ref[...]).astype(o_ref.dtype)


def decentralized_feature_extraction(features, params, *, tm=4096,
                                     out_dtype=jnp.float32, return_padded=False):
    """features: (N, in_feats) float32; params: dict of weights (see init_params)."""
    N, F = features.shape
    H = params["w1"].shape[1]

    # ---- Host-side prep (cheap, done once per call; fuses under jit) ---------------------------
    # Fold BatchNorm1d (inference) into the first Linear.
    scale = params["gamma"] * jax.lax.rsqrt(params["var"] + BN_EPS)          # (1, H)
    w1f = params["w1"] * scale                                               # (F, H)
    b1f = (params["b1"] - params["mu"]) * scale + params["beta"]             # (1, H)

    # Lane-dense layout: pack samples when F divides 128, otherwise zero-pad F to a 128 multiple.
    if F <= 128 and 128 % F == 0:
        pack, F_pad = 128 // F, F
    else:
        pack, F_pad = 1, _round_up(F, 128)
    Fp, Hp = pack * F_pad, pack * H

    if F_pad != F:
        w1f = jnp.pad(w1f, ((0, F_pad - F), (0, 0)))                         # extra input rows: zeros
        w2p = jnp.pad(params["w2"], ((0, 0), (0, F_pad - F)))                # extra output cols: zeros
        b2p = jnp.pad(params["b2"], ((0, 0), (0, F_pad - F)))
    else:
        w2p, b2p = params["w2"], params["b2"]

    w1_bd = _block_diag(w1f, pack).astype(jnp.bfloat16)                      # (Fp, Hp)
    w2_bd = _block_diag(w2p, pack).astype(jnp.bfloat16)                      # (Hp, Fp)
    b1_bd = jnp.tile(b1f, (1, pack)).astype(jnp.float32)                     # (1, Hp)
    b2_bd = jnp.tile(b2p, (1, pack)).astype(jnp.float32)                     # (1, Fp)
    alpha = params["alpha"].reshape(-1)[:1].astype(jnp.float32)              # (1,) scalar -> SMEM

    # ---- Row tiling ---------------------------------------------------------------------------
    tcs = _tensorcores_per_chip()
    rows = -(-N // pack)                           # packed rows needed
    rows8 = _round_up(rows, 8)
    tm_eff = max(8, min(_round_up(tm, 8), rows8))
    # Only split a single-tile workload into 2 grid steps on 2-TC parts (v7x megacore);
    # on v5e/v6e the grid is a serial loop and splitting only adds ~0.35us/step overhead.
    if tcs >= 2 and tm_eff >= rows8 and rows8 >= 16:
        tm_eff = _round_up(rows8 // 2, 8)
    rows_pad = _round_up(rows, tm_eff)
    if tcs >= 2 and rows_pad // tm_eff > 1:
        rows_pad = _round_up(rows_pad, 2 * tm_eff)  # even step count across the two TensorCores
    n_pad = rows_pad * pack

    # Keep x in f32 (no host-side astype pass); padding (when needed) stays f32 and is small.
    x = features
    pad_rows, pad_cols = n_pad - N, F_pad - F
    if pad_rows or pad_cols:
        x = jnp.pad(x, ((0, pad_rows), (0, pad_cols)))
    x_packed = x.reshape(rows_pad, Fp)             # bitwise-identical memory when pack > 1

    # ---- VMEM budget (double-buffered I/O + f32/bf16 intermediates), capped for v5e/v7x --------
    out_bytes = jnp.dtype(out_dtype).itemsize
    vmem_est = (2 * tm_eff * Fp * 4                # x f32 tile, double-buffered
                + 2 * tm_eff * Fp * out_bytes      # out tile, double-buffered
                + tm_eff * Hp * (4 + 2)            # h f32 + bf16 copy
                + 2 * 2 * Fp * Hp * 2              # bf16 weights (both linears), double-buffered
                + 4 * (Hp + Fp) * 4)               # biases + slack
    vmem_limit = int(min(48 * 1024 * 1024, max(32 * 1024 * 1024, 1.5 * vmem_est)))

    full = lambda shape: pl.BlockSpec(shape, lambda i: (0, 0))

    out_packed = pl.pallas_call(
        dfe_kernel,
        out_shape=jax.ShapeDtypeStruct((rows_pad, Fp), out_dtype),
        grid_spec=pltpu.PrefetchScalarGridSpec(
            num_scalar_prefetch=0,
            grid=(rows_pad // tm_eff,),
            in_specs=[
                pl.BlockSpec(memory_space=pltpu.MemorySpace.SMEM),   # alpha (scalar)
                pl.BlockSpec((tm_eff, Fp), lambda i: (i, 0)),        # x tile (lane-dense, f32)
                full((Fp, Hp)),                                      # W1 (BN-folded, block-diag, bf16)
                full((1, Hp)),                                       # b1 (BN-folded)
                full((Hp, Fp)),                                      # W2 (block-diag, bf16)
                full((1, Fp)),                                       # b2
            ],
            out_specs=pl.BlockSpec((tm_eff, Fp), lambda i: (i, 0)),
        ),
        compiler_params=pltpu.CompilerParams(
            dimension_semantics=("parallel",),
            vmem_limit_bytes=vmem_limit),
    )(alpha, x_packed, w1_bd, b1_bd, w2_bd, b2_bd)

    if pack > 1:
        out_full = out_packed.reshape(n_pad, F)
        # Padded rows are garbage (bias/PReLU make them nonzero); return_padded callers must mask them.
        return out_full if return_padded else out_full[:N]
    if return_padded and F_pad == F:
        return out_packed
    return out_packed[:N, :F]


def init_params(key, in_feats, hidden_dim, heads0):
    """Deterministic synthetic parameter init (shapes match the torch module)."""
    H = hidden_dim * heads0
    ks = jax.random.split(key, 8)
    return {
        # layers[1]: Linear(in_feats, H) -> stored transposed (F, H)
        "w1": jax.random.normal(ks[0], (in_feats, H), jnp.float32) * 0.1,
        "b1": jax.random.normal(ks[1], (1, H), jnp.float32) * 0.1,
        # layers[3][0]: BatchNorm1d(H) affine + running stats (randomized so BN is non-trivial)
        "gamma": 1.0 + 0.1 * jax.random.normal(ks[2], (1, H), jnp.float32),
        "beta": 0.1 * jax.random.normal(ks[3], (1, H), jnp.float32),
        "mu": 0.1 * jax.random.normal(ks[4], (1, H), jnp.float32),
        "var": 1.0 + 0.1 * jax.random.uniform(ks[5], (1, H), jnp.float32),
        # layers[3][1]: PReLU (single shared parameter, torch default init 0.25)
        "alpha": jnp.full((1,), 0.25, jnp.float32),
        # layers[3][3]: Linear(H, in_feats) -> stored transposed (H, F)
        "w2": jax.random.normal(ks[6], (H, in_feats), jnp.float32) * 0.1,
        "b2": jax.random.normal(ks[7], (1, in_feats), jnp.float32) * 0.1,
    }


def reference(features, p):
    """Pure-JAX f32 reference of the torch forward (eval mode)."""
    h = features @ p["w1"] + p["b1"]
    h = (h - p["mu"]) * jax.lax.rsqrt(p["var"] + BN_EPS) * p["gamma"] + p["beta"]
    h = jnp.where(h > 0, h, p["alpha"][0] * h)
    return h @ p["w2"] + p["b2"]


if __name__ == "__main__":
    key = jax.random.PRNGKey(0)
    k_feat, k_par, k_feat2, k_par2 = jax.random.split(key, 4)

    # Case 1: in_feats=32 divides 128 -> sample-packing path. N=50 exercises row padding.
    N, in_feats, hidden_dim, heads0 = 50, 32, 16, 4
    features = jax.random.normal(k_feat, (N, in_feats), jnp.float32)
    params = init_params(k_par, in_feats, hidden_dim, heads0)

    fwd = jax.jit(decentralized_feature_extraction)
    out = jax.block_until_ready(fwd(features, params))
    ref = reference(features, params)
    assert out.shape == (N, in_feats)
    max_err = float(jnp.max(jnp.abs(out - ref)))
    assert jnp.allclose(out, ref, atol=5e-2, rtol=5e-2), f"pack path mismatch (max abs err {max_err})"

    # Case 2: module-default in_feats=82 (does not divide 128) -> lane-dense F-padding fallback.
    N2, in_feats2 = 50, 82
    features2 = jax.random.normal(k_feat2, (N2, in_feats2), jnp.float32)
    params2 = init_params(k_par2, in_feats2, hidden_dim, heads0)
    out2 = jax.block_until_ready(jax.jit(decentralized_feature_extraction)(features2, params2))
    ref2 = reference(features2, params2)
    assert out2.shape == (N2, in_feats2)
    max_err2 = float(jnp.max(jnp.abs(out2 - ref2)))
    assert jnp.allclose(out2, ref2, atol=5e-2, rtol=5e-2), f"pad path mismatch (max abs err {max_err2})"

    # Optional low-HBM-traffic bf16 output path (for downstream consumers that tolerate bf16).
    out_bf16 = jax.block_until_ready(
        decentralized_feature_extraction(features, params, out_dtype=jnp.bfloat16))
    assert out_bf16.shape == (N, in_feats)
    assert bool(jnp.all(jnp.isfinite(out_bf16.astype(jnp.float32))))

    print("KERNEL_OK")
</pallas_src>

<mosaic_0001>
module attributes {stable_mosaic.version = 11 : i64} {
  func.func @dfe_kernel(%arg0: i32, %arg1: memref<1xf32, #tpu.memory_space<smem>>, %arg2: memref<16x128xf32, #tpu.memory_space<vmem>>, %arg3: memref<128x256xbf16, #tpu.memory_space<vmem>>, %arg4: memref<1x256xf32, #tpu.memory_space<vmem>>, %arg5: memref<256x128xbf16, #tpu.memory_space<vmem>>, %arg6: memref<1x128xf32, #tpu.memory_space<vmem>>, %arg7: memref<16x128xf32, #tpu.memory_space<vmem>>) attributes {dimension_semantics = [#tpu.dimension_semantics<parallel>], iteration_bounds = array<i64: 1>, scalar_prefetch = 0 : i64, scratch_operands = 0 : i64, tpu.core_type = #tpu.core_type<tc>, window_params = [{transform_indices = @transform_0, window_bounds = array<i64: 1>}, {transform_indices = @transform_1, window_bounds = array<i64: 16, 128>}, {pipeline_mode = #tpu.pipeline_mode<synchronous>, transform_indices = @transform_2, window_bounds = array<i64: 128, 256>}, {pipeline_mode = #tpu.pipeline_mode<synchronous>, transform_indices = @transform_3, window_bounds = array<i64: 1, 256>}, {pipeline_mode = #tpu.pipeline_mode<synchronous>, transform_indices = @transform_4, window_bounds = array<i64: 256, 128>}, {pipeline_mode = #tpu.pipeline_mode<synchronous>, transform_indices = @transform_5, window_bounds = array<i64: 1, 128>}, {transform_indices = @transform_6, window_bounds = array<i64: 16, 128>}]} {
    %c0 = arith.constant 0 : index
    %c0_0 = arith.constant 0 : index
    %0 = vector.load %arg2[%c0, %c0_0] : memref<16x128xf32, #tpu.memory_space<vmem>>, vector<16x128xf32>
    %1 = arith.truncf %0 : vector<16x128xf32> to vector<16x128xbf16>
    %c0_1 = arith.constant 0 : index
    %c0_2 = arith.constant 0 : index
    %2 = vector.load %arg3[%c0_1, %c0_2] : memref<128x256xbf16, #tpu.memory_space<vmem>>, vector<128x256xbf16>
    %cst = arith.constant dense<0.000000e+00> : vector<16x256xf32>
    %3 = tpu.matmul %1, %2, %cst {dimension_numbers = #tpu.dot_dimension_numbers<[1], [0], [0], [1], [0, 0, 1, 1], [], []>} : vector<16x128xbf16>, vector<128x256xbf16>, vector<16x256xf32> -> vector<16x256xf32>
    %c0_3 = arith.constant 0 : index
    %c0_4 = arith.constant 0 : index
    %4 = vector.load %arg4[%c0_3, %c0_4] : memref<1x256xf32, #tpu.memory_space<vmem>>, vector<1x256xf32>
    %5 = vector.broadcast %4 : vector<1x256xf32> to vector<16x256xf32>
    %6 = arith.addf %3, %5 : vector<16x256xf32>
    %c0_5 = arith.constant 0 : index
    %7 = memref.load %arg1[%c0_5] : memref<1xf32, #tpu.memory_space<smem>>
    %cst_6 = arith.constant 0.000000e+00 : f32
    %8 = vector.broadcast %cst_6 : f32 to vector<16x256xf32>
    %9 = arith.cmpf ogt, %6, %8 : vector<16x256xf32>
    %10 = vector.broadcast %7 : f32 to vector<16x256xf32>
    %11 = arith.mulf %10, %6 : vector<16x256xf32>
    %12 = arith.select %9, %6, %11 : vector<16x256xi1>, vector<16x256xf32>
    %13 = arith.truncf %12 : vector<16x256xf32> to vector<16x256xbf16>
    %c0_7 = arith.constant 0 : index
    %c0_8 = arith.constant 0 : index
    %14 = vector.load %arg5[%c0_7, %c0_8] : memref<256x128xbf16, #tpu.memory_space<vmem>>, vector<256x128xbf16>
    %cst_9 = arith.constant dense<0.000000e+00> : vector<16x128xf32>
    %15 = tpu.matmul %13, %14, %cst_9 {dimension_numbers = #tpu.dot_dimension_numbers<[1], [0], [0], [1], [0, 0, 1, 1], [], []>} : vector<16x256xbf16>, vector<256x128xbf16>, vector<16x128xf32> -> vector<16x128xf32>
    %c0_10 = arith.constant 0 : index
    %c0_11 = arith.constant 0 : index
    %16 = vector.load %arg6[%c0_10, %c0_11] : memref<1x128xf32, #tpu.memory_space<vmem>>, vector<1x128xf32>
    %17 = vector.broadcast %16 : vector<1x128xf32> to vector<16x128xf32>
    %18 = arith.addf %15, %17 : vector<16x128xf32>
    %c0_12 = arith.constant 0 : index
    %c0_13 = arith.constant 0 : index
    %19 = vector.load %arg7[%c0_12, %c0_13] : memref<16x128xf32, #tpu.memory_space<vmem>>, vector<16x128xf32>
    tpu.vector_store %arg7[%c0_12, %c0_13], %18 {strides = array<i32>} : memref<16x128xf32, #tpu.memory_space<vmem>>, vector<16x128xf32>,
    return
  }
  func.func @transform_0(%arg0: i32) -> i32 {
    %c0_i32 = arith.constant 0 : i32
    %c0_i32_0 = arith.constant 0 : i32
    return %c0_i32 : i32
  }
  func.func @transform_1(%arg0: i32) -> (i32, i32) {
    %c0_i32 = arith.constant 0 : i32
    %c0_i32_0 = arith.constant 0 : i32
    return %arg0, %c0_i32 : i32, i32
  }
  func.func @transform_2(%arg0: i32) -> (i32, i32) {
    %c0_i32 = arith.constant 0 : i32
    %c0_i32_0 = arith.constant 0 : i32
    %c0_i32_1 = arith.constant 0 : i32
    return %c0_i32, %c0_i32_0 : i32, i32
  }
  func.func @transform_3(%arg0: i32) -> (i32, i32) {
    %c0_i32 = arith.constant 0 : i32
    %c0_i32_0 = arith.constant 0 : i32
    %c0_i32_1 = arith.constant 0 : i32
    return %c0_i32, %c0_i32_0 : i32, i32
  }
  func.func @transform_4(%arg0: i32) -> (i32, i32) {
    %c0_i32 = arith.constant 0 : i32
    %c0_i32_0 = arith.constant 0 : i32
    %c0_i32_1 = arith.constant 0 : i32
    return %c0_i32, %c0_i32_0 : i32, i32
  }
  func.func @transform_5(%arg0: i32) -> (i32, i32) {
    %c0_i32 = arith.constant 0 : i32
    %c0_i32_0 = arith.constant 0 : i32
    %c0_i32_1 = arith.constant 0 : i32
    return %c0_i32, %c0_i32_0 : i32, i32
  }
  func.func @transform_6(%arg0: i32) -> (i32, i32) {
    %c0_i32 = arith.constant 0 : i32
    %c0_i32_0 = arith.constant 0 : i32
    return %arg0, %c0_i32 : i32, i32
  }
}

</mosaic_0001>

<bundles_post_ra>
// kernel: decentralized_feature_extraction.1
= control target key start
LH: loop header
LB: loop body
LE: loop exit
PB: predicated region body
PF: predicated region fallthrough
CT: control target
= control target key end

     0   :  { %s700_s2 = inlined_call_operand.vmem [shape: bf16[128,256], index: 2, kind: input, shape index: {}]   ;;  %s701_s4 = inlined_call_operand.vmem [shape: bf16[256,128], index: 4, kind: input, shape index: {}]   ;;  %s702_s1 = inlined_call_operand.vmem [shape: f32[16,128], index: 1, kind: input, shape index: {}]   ;;  %s703_s5 = inlined_call_operand.vmem [shape: f32[1,128], index: 5, kind: input, shape index: {}]   ;;  %s704_s3 = inlined_call_operand.vmem [shape: f32[1,256], index: 3, kind: input, shape index: {}]   ;;  %s705_s0 = inlined_call_operand.<no memory space> [shape: f32[1], index: 0, kind: input, shape index: {}]   ;;  %s706_s6 = inlined_call_operand.vmem [shape: f32[16,128], index: 6, kind: output, shape index: {}]  }
   0x1   :  { %v397_v0 = vld [vmem:[%s700_s2 + $0x70] sm:$0xf]  ;;  %v482_v1 = vld [vmem:[%s700_s2 + $0x74] sm:$0xf0]  ;;  %v481_v2 = vld [vmem:[%s700_s2 + $0x74] sm:$0xf] }
   0x2   :  { %v398_v3 = vor.u32 %v482_v1, %v397_v0  ;;  %v399_v4 = vld [vmem:[%s700_s2 + $0x78] sm:$0xf0]  ;;  %v389_v5 = vld [vmem:[%s700_s2 + $0x60] sm:$0xf]  ;;  %v480_v6 = vld [vmem:[%s700_s2 + $0x64] sm:$0xf0] }
   0x3   :  { %v402_v7 = vor.u32 %v481_v2, %v399_v4  ;;  %v479_v8 = vld [vmem:[%s700_s2 + $0x64] sm:$0xf]  ;;  %v391_v9 = vld [vmem:[%s700_s2 + $0x68] sm:$0xf0]  ;;  %v390_v10 = vor.u32 %v480_v6, %v389_v5  ;;  %v381_v12 = vld [vmem:[%s700_s2 + $0x50] sm:$0xf] }
   0x4   :  { %129 = vmatpush.bf16.msra.mxu0 %v398_v3  ;;  %v394_v11 = vor.u32 %v479_v8, %v391_v9  ;;  %v478_v13 = vld [vmem:[%s700_s2 + $0x54] sm:$0xf0]  ;;  %v477_v14 = vld [vmem:[%s700_s2 + $0x54] sm:$0xf]  ;;  %v383_v15 = vld [vmem:[%s700_s2 + $0x58] sm:$0xf0]  ;;  %v162_v9 = vstv %s705_s0 }
   0x5   :  { %143 = vmatpush.bf16.msra.mxu1 %v402_v7  ;;  %v382_v16 = vor.u32 %v478_v13, %v381_v12  ;;  %v386_v17 = vor.u32 %v477_v14, %v383_v15  ;;  %v373_v18 = vld [vmem:[%s700_s2 + $0x40] sm:$0xf]  ;;  %v476_v19 = vld [vmem:[%s700_s2 + $0x44] sm:$0xf0]  ;;  %v475_v20 = vld [vmem:[%s700_s2 + $0x44] sm:$0xf] }
   0x6   :  { %v375_v21 = vld [vmem:[%s700_s2 + $0x48] sm:$0xf0]  ;;  %v374_v22 = vor.u32 %v476_v19, %v373_v18  ;;  %v490_v23 = vld [vmem:[%s701_s4 + $0x38] sm:$0xff]  ;;  %v365_v26 = vld [vmem:[%s700_s2 + $0x30] sm:$0xf] }
   0x7   :  { %v498_v24 = vld [vmem:[%s701_s4 + $0x78] sm:$0xff]  ;;  %v378_v25 = vor.u32 %v475_v20, %v375_v21  ;;  %v473_v28 = vld [vmem:[%s700_s2 + $0x34] sm:$0xf]  ;;  %305 = vmatpush.bf16.msra.mxu2 %v490_v23  ;;  %v357_v34 = vld [vmem:[%s700_s2 + $0x20] sm:$0xf] }
   0x8   :  { %130 = vmatpush.bf16.msra.mxu0 %v390_v10  ;;  %v474_v27 = vld [vmem:[%s700_s2 + $0x34] sm:$0xf0]  ;;  %v367_v29 = vld [vmem:[%s700_s2 + $0x38] sm:$0xf0]  ;;  %319 = vmatpush.bf16.msra.mxu3 %v498_v24  ;;  %v489_v30 = vld [vmem:[%s701_s4 + $0x30] sm:$0xff] }
   0x9   :  { %144 = vmatpush.bf16.msra.mxu1 %v394_v11  ;;  %v497_v31 = vld [vmem:[%s701_s4 + $0x70] sm:$0xff]  ;;  %v366_v32 = vor.u32 %v474_v27, %v365_v26  ;;  %v370_v33 = vor.u32 %v473_v28, %v367_v29  ;;  %v472_v35 = vld [vmem:[%s700_s2 + $0x24] sm:$0xf0]  ;;  %v471_v36 = vld [vmem:[%s700_s2 + $0x24] sm:$0xf] }
   0xa   :  { %v359_v37 = vld [vmem:[%s700_s2 + $0x28] sm:$0xf0]  ;;  %v358_v40 = vor.u32 %v472_v35, %v357_v34  ;;  %v349_v42 = vld [vmem:[%s700_s2 + $0x10] sm:$0xf]  ;;  %v470_v43 = vld [vmem:[%s700_s2 + $0x14] sm:$0xf0] }
   0xb   :  { %306 = vmatpush.bf16.msra.mxu2 %v489_v30  ;;  %v488_v38 = vld [vmem:[%s701_s4 + $0x28] sm:$0xff]  ;;  %v362_v41 = vor.u32 %v471_v36, %v359_v37  ;;  %v469_v44 = vld [vmem:[%s700_s2 + $0x14] sm:$0xf]  ;;  %v351_v45 = vld [vmem:[%s700_s2 + $0x18] sm:$0xf0]  ;;  %v350_v48 = vor.u32 %v470_v43, %v349_v42 }
   0xc   :  { %131 = vmatpush.bf16.msra.mxu0 %v382_v16  ;;  %320 = vmatpush.bf16.msra.mxu3 %v497_v31  ;;  %v496_v39 = vld [vmem:[%s701_s4 + $0x68] sm:$0xff]  ;;  %v487_v46 = vld [vmem:[%s701_s4 + $0x20] sm:$0xff]  ;;  %v354_v49 = vor.u32 %v469_v44, %v351_v45  ;;  %v486_v59 = vld [vmem:[%s701_s4 + $0x18] sm:$0xff] }
   0xd   :  { %145 = vmatpush.bf16.msra.mxu1 %v386_v17  ;;  %v495_v47 = vld [vmem:[%s701_s4 + $0x60] sm:$0xff]  ;;  %v468_v51 = vld [vmem:[%s700_s2 + $0x4] sm:$0xf0]  ;;  %v343_v53 = vld [vmem:[%s700_s2 + $0x8] sm:$0xf0] }
   0xe   :  { %v341_v50 = vld [vmem:[%s700_s2] sm:$0xf]  ;;  %v467_v52 = vld [vmem:[%s700_s2 + $0x4] sm:$0xf]  ;;  %v25_v56 = vld [vmem:[%s702_s1 + $0x8] sm:$0xff] }
   0xf   :  { %307 = vmatpush.bf16.msra.mxu2 %v488_v38  ;;  %v342_v54 = vor.u32 %v468_v51, %v341_v50  ;;  %v24_v55 = vld [vmem:[%s702_s1] sm:$0xff]  ;;  %v346_v57 = vor.u32 %v467_v52, %v343_v53  ;;  %v494_v60 = vld [vmem:[%s701_s4 + $0x58] sm:$0xff]  ;;  %v485_v61 = vld [vmem:[%s701_s4 + $0x10] sm:$0xff] }
  0x10   :  { %132 = vmatpush.bf16.msra.mxu0 %v374_v22  ;;  %321 = vmatpush.bf16.msra.mxu3 %v496_v39  ;;  %v26_v58 = vpack.c.bf16 %v25_v56, %v24_v55  ;;  %v493_v62 = vld [vmem:[%s701_s4 + $0x50] sm:$0xff]  ;;  %v484_v63 = vld [vmem:[%s701_s4 + $0x8] sm:$0xff]  ;;  %v483_v1 = vld [vmem:[%s701_s4] sm:$0xff] }
  0x11   :  { %146 = vmatpush.bf16.msra.mxu1 %v378_v25  ;;  %v492_v0 = vld [vmem:[%s701_s4 + $0x48] sm:$0xff]  ;;  %v491_v2 = vld [vmem:[%s701_s4 + $0x40] sm:$0xff] }
  0x12   :  { %v43_v3 = vld [vmem:[%s704_s3] sm:$0x3] }
  0x13   :  { %308 = vmatpush.bf16.msra.mxu2 %v487_v46  ;;  %v45_v5 = vperm.slane %v43_v3, 0  ;;  %v46_v7 = vperm.slane %v43_v3, 1  ;;  %v499_v25 = vld [vmem:[%s703_s5] ss:$0 sm:$0xff] }
  0x14   :  { %133 = vmatpush.bf16.msra.mxu0 %v366_v32  ;;  %322 = vmatpush.bf16.msra.mxu3 %v495_v47 }
  0x15   :  { %147 = vmatpush.bf16.msra.mxu1 %v370_v33 }
  0x17   :  { %309 = vmatpush.bf16.msra.mxu2 %v486_v59 }
  0x18   :  { %134 = vmatpush.bf16.msra.mxu0 %v358_v40  ;;  %323 = vmatpush.bf16.msra.mxu3 %v494_v60 }
  0x19   :  { %148 = vmatpush.bf16.msra.mxu1 %v362_v41 }
  0x1b   :  { %310 = vmatpush.bf16.msra.mxu2 %v485_v61 }
  0x1c   :  { %135 = vmatpush.bf16.msra.mxu0 %v350_v48  ;;  %324 = vmatpush.bf16.msra.mxu3 %v493_v62 }
  0x1d   :  { %149 = vmatpush.bf16.msra.mxu1 %v354_v49 }
  0x1f   :  { %311 = vmatpush.bf16.msra.mxu2 %v484_v63 }
  0x20   :  { %136 = vmatpush.bf16.msra.mxu0 %v342_v54  ;;  %325 = vmatpush.bf16.msra.mxu3 %v492_v0 }
  0x21   :  { %150 = vmatpush.bf16.msra.mxu1 %v346_v57 }
  0x23   :  { %137 = vmatmul.bf16.vlgmr.msra.gmra.mxu0 %v26_v58  ;;  %312 = vmatpush.bf16.msra.mxu2 %v483_v1 }
  0x24   :  { %151 = vmatmul.bf16.vlgmr.msra.gmra.mxu1 %v26_v58  ;;  %326 = vmatpush.bf16.msra.mxu3 %v491_v2 }
  0xa0   :  { %v138_v4 = vpop.f32.mrf.mxu0 }
  0xa1   :  { %v152_v6 = vpop.f32.mrf.mxu1  ;;  %v139_v8 = vadd.f32 %v138_v4, %v45_v5 }
  0xa2   :  { %v153_v10 = vadd.f32 %v152_v6, %v46_v7 }
  0xa3   :  { %v163_v12 = vmul.f32 %v162_v9, %v139_v8  ;;  %vm158_vm0 = vcmp.gt.f32.partialorder %v139_v8, 0.0 }
  0xa4   :  { %v164_v15 = vmul.f32 %v162_v9, %v153_v10  ;;  %vm159_vm2 = vcmp.gt.f32.partialorder %v153_v10, 0.0 }
  0xa5   :  { %v167_v19 = vsel %vm158_vm0, %v139_v8, %v163_v12 }
  0xa6   :  { %v168_v22 = vsel %vm159_vm2, %v153_v10, %v164_v15 }
  0xa8   :  { %v140_v11 = vpop.f32.mrf.mxu0 }
  0xa9   :  { %v141_v13 = vadd.f32 %v140_v11, %v45_v5  ;;  %v154_v14 = vpop.f32.mrf.mxu1 }
  0xaa   :  { %v155_v16 = vadd.f32 %v154_v14, %v46_v7 }
  0xab   :  { %v165_v17 = vmul.f32 %v162_v9, %v141_v13  ;;  %vm160_vm1 = vcmp.gt.f32.partialorder %v141_v13, 0.0 }
  0xac   :  { %v166_v18 = vmul.f32 %v162_v9, %v155_v16  ;;  %vm161_vm3 = vcmp.gt.f32.partialorder %v155_v16, 0.0 }
  0xad   :  { %v169_v20 = vsel %vm160_vm1, %v141_v13, %v165_v17 }
  0xae   :  { %v171_v21 = vpack.c.bf16 %v169_v20, %v167_v19  ;;  %v170_v23 = vsel %vm161_vm3, %v155_v16, %v166_v18 }
  0xaf   :  { %v172_v24 = vpack.c.bf16 %v170_v23, %v168_v22 }
  0xb0   :  { %313 = vmatmul.bf16.vlgmr.msra.gmra.mxu2 %v171_v21 }
  0xb1   :  { %327 = vmatmul.bf16.vlgmr.msra.gmra.mxu3 %v172_v24 }
 0x133   :  { %v314_v26 = vpop.f32.mrf.mxu2 }
 0x134   :  { %v315_v27 = vadd.f32 %v499_v25, %v314_v26  ;;  %v328_v28 = vpop.f32.mrf.mxu3 }
 0x136   :  { %v329_v29 = vadd.f32 %v328_v28, %v315_v27 }
 0x138   :  { %333 = vst [vmem:[%s706_s6] sm:$0xff] %v329_v29 }
 0x13b   :  { %v316_v30 = vpop.f32.mrf.mxu2 }
 0x13c   :  { %v317_v31 = vadd.f32 %v499_v25, %v316_v30  ;;  %v330_v32 = vpop.f32.mrf.mxu3 }
 0x13e   :  { %v331_v33 = vadd.f32 %v330_v32, %v317_v31 }
 0x140   :  { %334 = vst [vmem:[%s706_s6 + $0x8] sm:$0xff] %v331_v33 }

</bundles_post_ra>
